<compile_context>
chip_gen: v5e
topology: v5e:2x2
jax: 0.10.0
libtpu: 0.0.40
codegen_flags: <defaults>
</compile_context>

<pallas_src>
import functools

import jax
import jax.numpy as jnp
from jax.experimental import pallas as pl
from jax.experimental.pallas import tpu as pltpu


def _focal_loss_kernel(logits_ref, targets_ref, alpha_ref, out_ref, *,
                       gamma, int_gamma, reduction, batch_size, block_b):
    i = pl.program_id(0)

    x = logits_ref[...].astype(jnp.float32)          # (TB, C) logits, f32 compute
    t = targets_ref[...]                             # (TB, 1) int32 class ids
    alpha_row = alpha_ref[...]                       # (1, C) f32 per-class weights

    # log_softmax along the class (lane) axis.
    m = jnp.max(x, axis=1, keepdims=True)            # (TB, 1)
    shifted = x - m                                  # (TB, C)
    lse = jnp.log(jnp.sum(jnp.exp(shifted), axis=1, keepdims=True))
    log_p = shifted - lse                            # (TB, C)

    # Gather log_p / alpha at the target class via one-hot (no dynamic gather on TPU).
    col = jax.lax.broadcasted_iota(jnp.int32, x.shape, 1)
    onehot = col == t
    log_pt = jnp.sum(jnp.where(onehot, log_p, 0.0), axis=1, keepdims=True)      # (TB, 1)
    alpha_t = jnp.sum(jnp.where(onehot, alpha_row, 0.0), axis=1, keepdims=True)  # (TB, 1)

    pt = jnp.exp(log_pt)
    one_minus_pt = 1.0 - pt
    if int_gamma is not None:
        # Integer gamma: repeated multiply on the VPU (no EUP exp/log, no 0**0 NaN).
        if int_gamma == 0:
            focal = jnp.ones_like(one_minus_pt)
        else:
            focal = one_minus_pt
            for _ in range(int_gamma - 1):
                focal = focal * one_minus_pt
    else:
        focal = jnp.power(one_minus_pt, gamma)

    loss = alpha_t * focal * (-log_pt)               # (TB, 1) per-example loss

    # Mask rows that are batch padding (B rounded up to a multiple of TB).
    row = i * block_b + jax.lax.broadcasted_iota(jnp.int32, (block_b, 1), 0)
    loss = jnp.where(row < batch_size, loss, 0.0)

    if reduction == "none":
        # TODO(synk): lane-dense (1, 1, TB) store skipped to avoid a sublane->lane
        # relayout; output is only B floats so the masked store cost is negligible.
        out_ref[...] = loss.reshape(1, block_b, 1)
    else:
        # 'mean' / 'sum': per-tile partial sum; the wrapper finishes the reduce.
        out_ref[...] = jnp.sum(loss).reshape(1, 1, 1)


def _choose_block_b(batch, num_classes, itemsize):
    """Largest batch tile (multiple of 8 rows) targeting ~1 MiB of logits per tile."""
    target_bytes = 1 << 20
    tb = max(8, target_bytes // max(1, num_classes * itemsize))
    tb = min(tb, 1024)
    tb = (tb // 8) * 8
    b_pad8 = ((batch + 7) // 8) * 8
    return max(8, min(tb, b_pad8))


def focal_loss(logits, targets, *, alpha=1.0, gamma=2.0, reduction="mean",
               block_b=None):
    """Pallas implementation of FocalLoss.forward.

    logits:  (B, C) float array (any float dtype; streamed in native dtype,
             computed in f32 inside the kernel).
    targets: (B,)   int array of class indices.
    alpha:   scalar, or a length-C list/array of per-class weights.
    """
    if gamma < 0:
        raise ValueError("gamma must be non-negative")
    if reduction not in ("mean", "sum", "none"):
        raise ValueError(f"unknown reduction: {reduction}")

    B, C = logits.shape

    # Per-class alpha row (scalar alpha is just a constant row).
    if isinstance(alpha, (float, int)):
        alpha_vec = jnp.full((1, C), float(alpha), dtype=jnp.float32)
    else:
        alpha_vec = jnp.asarray(alpha, dtype=jnp.float32).reshape(1, -1)
        if alpha_vec.shape[1] != C:
            raise ValueError("per-class alpha must have num_classes entries")

    # Batch tiling (multiple of 8 sublanes); pad B up to a whole number of tiles.
    if block_b is None:
        block_b = _choose_block_b(B, C, jnp.dtype(logits.dtype).itemsize)
    block_b = max(8, (int(block_b) // 8) * 8)
    num_tiles = -(-B // block_b)
    b_pad = num_tiles * block_b

    # Keep logits in their native dtype (e.g. bf16) across HBM->VMEM.
    logits_p = logits if b_pad == B else jnp.pad(logits, ((0, b_pad - B), (0, 0)))
    tgt = targets.astype(jnp.int32).reshape(B, 1)
    tgt_p = tgt if b_pad == B else jnp.pad(tgt, ((0, b_pad - B), (0, 0)))

    gamma_f = float(gamma)
    int_gamma = int(gamma_f) if (gamma_f.is_integer() and gamma_f <= 16) else None

    if reduction == "none":
        out_shape = jax.ShapeDtypeStruct((num_tiles, block_b, 1), jnp.float32)
        out_spec = pl.BlockSpec((1, block_b, 1), lambda i: (i, 0, 0))
    else:
        out_shape = jax.ShapeDtypeStruct((num_tiles, 1, 1), jnp.float32)
        out_spec = pl.BlockSpec((1, 1, 1), lambda i: (i, 0, 0))

    kernel = functools.partial(
        _focal_loss_kernel,
        gamma=gamma_f,
        int_gamma=int_gamma,
        reduction=reduction,
        batch_size=B,
        block_b=block_b,
    )

    out = pl.pallas_call(
        kernel,
        out_shape=out_shape,
        grid=(num_tiles,),
        in_specs=[
            pl.BlockSpec((block_b, C), lambda i: (i, 0)),   # logits tile
            pl.BlockSpec((block_b, 1), lambda i: (i, 0)),   # targets tile
            pl.BlockSpec((1, C), lambda i: (0, 0)),         # alpha row (replicated)
        ],
        out_specs=out_spec,
        compiler_params=pltpu.CompilerParams(
            dimension_semantics=("parallel",),               # v7x megacore sharding
            vmem_limit_bytes=32 * 1024 * 1024,
        ),
    )(logits_p, tgt_p, alpha_vec)

    # Final (tiny) reduce over per-tile partials happens in XLA.
    if reduction == "mean":
        return jnp.sum(out) / B
    if reduction == "sum":
        return jnp.sum(out)
    return out.reshape(b_pad)[:B]


def _reference_focal_loss(logits, targets, alpha=1.0, gamma=2.0, reduction="mean"):
    log_p = jax.nn.log_softmax(logits.astype(jnp.float32), axis=1)
    log_pt = jnp.take_along_axis(log_p, targets[:, None].astype(jnp.int32), axis=1)[:, 0]
    pt = jnp.exp(log_pt)
    if isinstance(alpha, (float, int)):
        alpha_t = float(alpha)
    else:
        alpha_t = jnp.asarray(alpha, jnp.float32)[targets]
    loss = alpha_t * jnp.power(1.0 - pt, gamma) * (-log_pt)
    if reduction == "mean":
        return loss.mean()
    if reduction == "sum":
        return loss.sum()
    return loss


if __name__ == "__main__":
    key = jax.random.PRNGKey(0)
    k1, k2, k3, k4 = jax.random.split(key, 4)

    # Case 1: small f32 case, all reductions, scalar alpha, gamma=2 (integer path).
    B, C = 8, 16
    logits = jax.random.normal(k1, (B, C), dtype=jnp.float32)
    targets = jax.random.randint(k2, (B,), 0, C, dtype=jnp.int32)

    for red in ("mean", "sum", "none"):
        out = jax.block_until_ready(
            focal_loss(logits, targets, alpha=1.0, gamma=2.0, reduction=red))
        ref = _reference_focal_loss(logits, targets, 1.0, 2.0, red)
        assert jnp.allclose(out, ref, atol=1e-5, rtol=1e-5), (red, out, ref)

    # Non-integer gamma path.
    out = jax.block_until_ready(
        focal_loss(logits, targets, alpha=0.5, gamma=1.5, reduction="mean"))
    ref = _reference_focal_loss(logits, targets, 0.5, 1.5, "mean")
    assert jnp.allclose(out, ref, atol=1e-5, rtol=1e-5), (out, ref)

    # Case 2: bf16 logits, ragged batch (padding + multi-tile grid), per-class alpha.
    B2, C2 = 37, 23
    logits2 = jax.random.normal(k3, (B2, C2), dtype=jnp.bfloat16)
    targets2 = jax.random.randint(k4, (B2,), 0, C2, dtype=jnp.int32)
    alpha_list = [0.5 + 0.01 * i for i in range(C2)]
    out2 = jax.block_until_ready(
        focal_loss(logits2, targets2, alpha=alpha_list, gamma=2.0,
                   reduction="mean", block_b=8))
    ref2 = _reference_focal_loss(logits2, targets2, alpha_list, 2.0, "mean")
    assert jnp.allclose(out2, ref2, atol=1e-4, rtol=1e-4), (out2, ref2)

    print("KERNEL_OK")
</pallas_src>

<mosaic_0001>
module attributes {stable_mosaic.version = 11 : i64} {
  func.func @_focal_loss_kernel(%arg0: i32, %arg1: memref<8x16xf32, #tpu.memory_space<vmem>>, %arg2: memref<8x1xi32, #tpu.memory_space<vmem>>, %arg3: memref<1x16xf32, #tpu.memory_space<vmem>>, %arg4: memref<1x1x1xf32, #tpu.memory_space<vmem>>) attributes {dimension_semantics = [#tpu.dimension_semantics<parallel>], iteration_bounds = array<i64: 1>, scalar_prefetch = 0 : i64, scratch_operands = 0 : i64, tpu.core_type = #tpu.core_type<tc>, window_params = [{transform_indices = @transform_0, window_bounds = array<i64: 8, 16>}, {transform_indices = @transform_1, window_bounds = array<i64: 8, 1>}, {pipeline_mode = #tpu.pipeline_mode<synchronous>, transform_indices = @transform_2, window_bounds = array<i64: 1, 16>}, {transform_indices = @transform_3, window_bounds = array<i64: 1, 1, 1>}]} {
    %c0 = arith.constant 0 : index
    %c0_0 = arith.constant 0 : index
    %0 = vector.load %arg1[%c0, %c0_0] : memref<8x16xf32, #tpu.memory_space<vmem>>, vector<8x16xf32>
    %c0_1 = arith.constant 0 : index
    %c0_2 = arith.constant 0 : index
    %1 = vector.load %arg2[%c0_1, %c0_2] : memref<8x1xi32, #tpu.memory_space<vmem>>, vector<8x1xi32>
    %c0_3 = arith.constant 0 : index
    %c0_4 = arith.constant 0 : index
    %2 = vector.load %arg3[%c0_3, %c0_4] : memref<1x16xf32, #tpu.memory_space<vmem>>, vector<1x16xf32>
    %cst = arith.constant dense<0xFF800000> : vector<8xf32>
    %3 = vector.multi_reduction <maximumf>, %0, %cst [1] : vector<8x16xf32> to vector<8xf32>
    %4 = vector.shape_cast %3 : vector<8xf32> to vector<8x1xf32>
    %5 = vector.broadcast %4 : vector<8x1xf32> to vector<8x16xf32>
    %6 = arith.subf %0, %5 : vector<8x16xf32>
    %7 = math.exp %6 : vector<8x16xf32>
    %cst_5 = arith.constant dense<0.000000e+00> : vector<8xf32>
    %8 = vector.multi_reduction <add>, %7, %cst_5 [1] : vector<8x16xf32> to vector<8xf32>
    %9 = vector.shape_cast %8 : vector<8xf32> to vector<8x1xf32>
    %10 = math.log %9 : vector<8x1xf32>
    %11 = vector.broadcast %10 : vector<8x1xf32> to vector<8x16xf32>
    %12 = arith.subf %6, %11 : vector<8x16xf32>
    %13 = tpu.iota {dimensions = array<i32: 1>} : vector<8x16xi32>
    %14 = vector.broadcast %1 : vector<8x1xi32> to vector<8x16xi32>
    %15 = arith.cmpi eq, %13, %14 : vector<8x16xi32>
    %cst_6 = arith.constant 0.000000e+00 : f32
    %16 = vector.broadcast %cst_6 : f32 to vector<8x16xf32>
    %17 = arith.select %15, %12, %16 : vector<8x16xi1>, vector<8x16xf32>
    %cst_7 = arith.constant dense<0.000000e+00> : vector<8xf32>
    %18 = vector.multi_reduction <add>, %17, %cst_7 [1] : vector<8x16xf32> to vector<8xf32>
    %19 = vector.shape_cast %18 : vector<8xf32> to vector<8x1xf32>
    %cst_8 = arith.constant 0.000000e+00 : f32
    %20 = vector.shape_cast %2 : vector<1x16xf32> to vector<1x16xf32>
    %21 = vector.broadcast %20 : vector<1x16xf32> to vector<8x16xf32>
    %22 = vector.broadcast %cst_8 : f32 to vector<8x16xf32>
    %23 = arith.select %15, %21, %22 : vector<8x16xi1>, vector<8x16xf32>
    %cst_9 = arith.constant dense<0.000000e+00> : vector<8xf32>
    %24 = vector.multi_reduction <add>, %23, %cst_9 [1] : vector<8x16xf32> to vector<8xf32>
    %25 = vector.shape_cast %24 : vector<8xf32> to vector<8x1xf32>
    %26 = math.exp %19 : vector<8x1xf32>
    %cst_10 = arith.constant 1.000000e+00 : f32
    %27 = vector.broadcast %cst_10 : f32 to vector<8x1xf32>
    %28 = arith.subf %27, %26 : vector<8x1xf32>
    %29 = arith.mulf %28, %28 : vector<8x1xf32>
    %30 = arith.mulf %25, %29 : vector<8x1xf32>
    %cst_11 = arith.constant 0.000000e+00 : f32
    %31 = vector.broadcast %cst_11 : f32 to vector<8x1xf32>
    %32 = arith.subf %31, %19 : vector<8x1xf32>
    %33 = arith.mulf %30, %32 : vector<8x1xf32>
    %c8_i32 = arith.constant 8 : i32
    %34 = arith.muli %arg0, %c8_i32 : i32
    %35 = tpu.iota {dimensions = array<i32: 0>} : vector<8x1xi32>
    %36 = vector.broadcast %34 : i32 to vector<8x1xi32>
    %37 = arith.addi %36, %35 : vector<8x1xi32>
    %c8_i32_12 = arith.constant 8 : i32
    %38 = vector.broadcast %c8_i32_12 : i32 to vector<8x1xi32>
    %39 = arith.cmpi slt, %37, %38 : vector<8x1xi32>
    %cst_13 = arith.constant 0.000000e+00 : f32
    %40 = vector.broadcast %cst_13 : f32 to vector<8x1xf32>
    %41 = arith.select %39, %33, %40 : vector<8x1xi1>, vector<8x1xf32>
    %42 = vector.shape_cast %41 : vector<8x1xf32> to vector<1x8x1xf32>
    %cst_14 = arith.constant dense<0.000000e+00> : vector<1xf32>
    %43 = vector.multi_reduction <add>, %42, %cst_14 [1, 2] : vector<1x8x1xf32> to vector<1xf32>
    %44 = vector.shape_cast %43 : vector<1xf32> to vector<1x1x1xf32>
    %45 = vector.extract %44[0, 0, 0] : f32 from vector<1x1x1xf32>
    %46 = vector.broadcast %45 : f32 to vector<1x1x1xf32>
    %c0_15 = arith.constant 0 : index
    %c0_16 = arith.constant 0 : index
    %c0_17 = arith.constant 0 : index
    %47 = vector.load %arg4[%c0_15, %c0_16, %c0_17] : memref<1x1x1xf32, #tpu.memory_space<vmem>>, vector<1x1x1xf32>
    tpu.vector_store %arg4[%c0_15, %c0_16, %c0_17], %46 {strides = array<i32>} : memref<1x1x1xf32, #tpu.memory_space<vmem>>, vector<1x1x1xf32>,
    return
  }
  func.func @transform_0(%arg0: i32) -> (i32, i32) {
    %c0_i32 = arith.constant 0 : i32
    %c0_i32_0 = arith.constant 0 : i32
    return %arg0, %c0_i32 : i32, i32
  }
  func.func @transform_1(%arg0: i32) -> (i32, i32) {
    %c0_i32 = arith.constant 0 : i32
    %c0_i32_0 = arith.constant 0 : i32
    return %arg0, %c0_i32 : i32, i32
  }
  func.func @transform_2(%arg0: i32) -> (i32, i32) {
    %c0_i32 = arith.constant 0 : i32
    %c0_i32_0 = arith.constant 0 : i32
    %c0_i32_1 = arith.constant 0 : i32
    return %c0_i32, %c0_i32_0 : i32, i32
  }
  func.func @transform_3(%arg0: i32) -> (i32, i32, i32) {
    %c0_i32 = arith.constant 0 : i32
    %c0_i32_0 = arith.constant 0 : i32
    %c0_i32_1 = arith.constant 0 : i32
    return %arg0, %c0_i32, %c0_i32_0 : i32, i32, i32
  }
}

</mosaic_0001>

<bundles_post_ra>
// kernel: tpu_custom_call.1
= control target key start
LH: loop header
LB: loop body
LE: loop exit
PB: predicated region body
PF: predicated region fallthrough
CT: control target
= control target key end

     0   :  { %vm18_vm0 = vcmask 130048   ;;  %s169_s0 = inlined_call_operand.vmem [shape: f32[8,16], index: 0, kind: input, shape index: {}]   ;;  %s170_s1 = inlined_call_operand.vmem [shape: s32[8,1], index: 1, kind: input, shape index: {}]   ;;  %s171_s2 = inlined_call_operand.vmem [shape: f32[1,16], index: 2, kind: input, shape index: {}]   ;;  %s172_s3 = inlined_call_operand.hbm [shape: f32[1,1,1], index: 3, kind: output, shape index: {}]  }
   0x1   :  { %v15_v0 = vld [vmem:[%s169_s0] sm:$0xff] }
   0x2   :  { %8 = vsyncpa [#allocation3], 0  ;;  %v19_v1 = vsel %vm18_vm0, %v15_v0, -inf  ;;  %v16_v2 = vld [vmem:[%s170_s1] sm:$0xff]  ;;  %v131_v3 = vmov 0   ;;  %v31_v9 = vlaneseq  ;;  %vm62_vm2 = vcmask 7168  }
   0x3   :  { %20 = vmax.xlane.f32.xlu0 %v19_v1  ;;  %96 = vset.pattern.permute.xlu1 %v131_v3  ;;  %v98_v11 = vld [vmem:[%s171_s2] ss:$0 sm:$0xff]  ;;  %s132_s1 = smov [#allocation2]   ;;  %s83_s19 = sshll.u32 %s172_s3, 4  ;;  %vm74_vm3 = vcmask 0   ;;  %s84_s19 = int_to_ptr.hbm [resolvable:$true] %s83_s19 }
   0x4   :  { %97 = vset.pattern.permute.xlu0 %v131_v3  ;;  %34 = vperm.xlu1 %96, %v16_v2   ;;  %v32_v12 = vand.u32 127, %v31_v9  ;;  %s81_s2 = sshll.u32 %s132_s1, 4  ;;  %s82_s2 = int_to_ptr.vmem [resolvable:$true] %s81_s2 }
  0x76   :  { %v21_v4 = vpop.xlane.xlu0 %20  ;;  %v35_v10 = vpop.permute.xlu1 %34 }
  0x77   :  { %v22_v5 = vsub.f32 %v15_v0, %v21_v4  ;;  %vm36_vm1 = vcmp.eq.s32.totalorder %v32_v12, %v35_v10 }
  0x78   :  { %v44_v13 = vsel %vm36_vm1, %v98_v11, 0.0 }
  0x79   :  { %v23_v6 = vmul.f32 1.442695, %v22_v5  ;;  %v45_v14 = vsel %vm18_vm0, %v44_v13, 0.0 }
  0x7a   :  { %46 = vadd.xlane.f32.xlu2 %v45_v14 }
  0x7b   :  { %99 = vpow2.f32 %v23_v6 }
  0x81   :  { %v100_v7 = vpop.eup %99 }
  0x82   :  { %v25_v8 = vsel %vm18_vm0, %v100_v7, 0.0 }
  0x83   :  { %26 = vadd.xlane.f32.xlu0 %v25_v8 }
  0xed   :  { %v47_v26 = vpop.xlane.xlu2 %46 }
  0xf6   :  { %v27_v15 = vpop.xlane.xlu0 %26 }
  0xf7   :  { %101 = vlog2.f32 %v27_v15 }
  0xfd   :  { %v102_v16 = vpop.eup %101 }
  0xfe   :  { %v29_v17 = vmul.f32 0.6931472, %v102_v16 }
 0x100   :  { %v30_v18 = vsub.f32 %v22_v5, %v29_v17 }
 0x102   :  { %v37_v19 = vsel %vm36_vm1, %v30_v18, 0.0 }
 0x103   :  { %v38_v20 = vsel %vm18_vm0, %v37_v19, 0.0 }
 0x104   :  { %39 = vadd.xlane.f32.xlu1 %v38_v20 }
 0x177   :  { %v40_v21 = vpop.xlane.xlu1 %39 }
 0x178   :  { %v48_v22 = vmul.f32 1.442695, %v40_v21  ;;  %v53_v27 = vsub.f32 0.0, %v40_v21 }
 0x17a   :  { %103 = vpow2.f32 %v48_v22 }
 0x180   :  { %v104_v23 = vpop.eup %103 }
 0x181   :  { %v50_v24 = vsub.f32 1.0, %v104_v23 }
 0x183   :  { %v51_v25 = vmul.f32 %v50_v24, %v50_v24 }
 0x185   :  { %v52_v28 = vmul.f32 %v51_v25, %v47_v26 }
 0x187   :  { %v54_v29 = vmul.f32 %v53_v27, %v52_v28 }
 0x189   :  { %v63_v30 = vsel %vm62_vm2, %v54_v29, 0.0 }
 0x18a   :  { %64 = vadd.xlane.f32.xlu2 %v63_v30 }
 0x1fd   :  { %v65_v31 = vpop.xlane.xlu2 %64 }
 0x1fe   :  { %v66_v32 = vrot.slane %v65_v31, 4 }
 0x200   :  { %v67_v33 = vadd.f32 %v66_v32, %v65_v31 }
 0x202   :  { %v68_v34 = vrot.slane %v67_v33, 2 }
 0x204   :  { %v69_v35 = vadd.f32 %v68_v34, %v67_v33 }
 0x206   :  { %v70_v36 = vrot.slane %v69_v35, 1 }
 0x208   :  { %v71_v37 = vadd.f32 %v70_v36, %v69_v35 }
 0x20a   :  { %92 = vpush %v71_v37 }
 0x23b   :  { %s93_s20 = spop %92 }
 0x23c   :  { %v73_v38 = vstv %s93_s20 }
 0x23d   :  { %75 = vst.msk [vmem:[#allocation2] sm:$0x1] %vm74_vm3, %v73_v38 }
 0x23e   :  { %86 = dma.vmem_to_hbm [thread:$0]  %s82_s2, 16, %s84_s19, [#allocation3]  }
 0x23f   :  { %129 = dma.done.wait [#allocation3], 16  }
 0x240   :  { %130 = vsyncadd [#allocation3], 4294967280 }
 0x241   :  { %91 = vsyncpa [#allocation3], 1 }

</bundles_post_ra>
